<compile_context>
chip_gen: v7x
topology: tpu7x:2x2x1
jax: 0.10.0
libtpu: 0.0.40
codegen_flags: <defaults>
</compile_context>

<pallas_src>
import math
import functools

import jax
import jax.numpy as jnp
from jax import lax
from jax.experimental import pallas as pl
from jax.experimental.pallas import tpu as pltpu


def _cdiv(a, b):
    return (a + b - 1) // b


def _memory_kernel(z_ref, memn_ref, memt_ref, zout_ref, what_ref, *,
                   shrink_thres, hard_shrink, valid_lanes):
    z = z_ref[0].astype(jnp.float32)     # (C, T)
    mem_n = memn_ref[...]                # (M, C)  L2-row-normalized (hoisted)
    mem_t = memt_ref[...]                # (C, M)  transposed memory (hoisted)

    T = z.shape[-1]
    if valid_lanes is not None:
        # The last lane tile overruns L: zero the garbage tail columns so every
        # in-kernel value stays finite.  (Their output stores are masked by
        # Pallas anyway; nothing crosses lanes after this point.)
        lane = lax.broadcasted_iota(jnp.int32, (1, T), 1)
        is_last = pl.program_id(0) == pl.num_programs(0) - 1
        keep = jnp.logical_or(jnp.logical_not(is_last), lane < valid_lanes)
        z = jnp.where(keep, z, 0.0)

    # ---- cosine similarity over channels ------------------------------------
    # logit[m, l] = <mem_n[m], z[:, l]> / max(||z[:, l]||, 1e-8)
    dots = jnp.dot(mem_n, z, preferred_element_type=jnp.float32)        # (M, T) MXU
    z_norm = jnp.sqrt(jnp.sum(z * z, axis=0, keepdims=True))            # (1, T)
    logit = dots * (1.0 / jnp.maximum(z_norm, 1e-8))                    # divide only on (1, T)

    # ---- softmax over the memory axis (axis 0) -------------------------------
    mx = jnp.max(logit, axis=0, keepdims=True)
    e = jnp.exp(logit - mx)
    w = e * (1.0 / jnp.sum(e, axis=0, keepdims=True))

    # ---- hard shrink (compare + select) --------------------------------------
    if hard_shrink:
        w_hat = jnp.where(w > shrink_thres, w, 0.0)
    else:
        w_hat = jnp.maximum(w, 0.0)

    # ---- L1 normalize over the memory axis (entries >= 0, no abs needed) -----
    w_hat = w_hat * (1.0 / jnp.maximum(jnp.sum(w_hat, axis=0, keepdims=True), 1e-12))

    what_ref[0] = w_hat.astype(what_ref.dtype)

    # ---- z_out[c, l] = sum_m mem_t[c, m] * w_hat[m, l] (no per-step transpose)
    zout_ref[0] = jnp.dot(mem_t, w_hat,
                          preferred_element_type=jnp.float32).astype(zout_ref.dtype)


def memory_module_3d(z, memory, *, hard_shrink=True, lam=1.0,
                     lane_tile=None, w_hat_dtype=None,
                     max_tile_lanes=8192,
                     vmem_block_budget_bytes=12 * 1024 * 1024):
    """z: (N, C, D, H, W), memory: (M, C) -> (z_out (N,C,D,H,W), w_hat (N,M,D*H*W))."""
    N, C, D, H, W = z.shape
    M, C2 = memory.shape
    assert C == C2, "fea_dim mismatch"
    L = D * H * W

    out_dtype = z.dtype
    w_hat_dtype = out_dtype if w_hat_dtype is None else w_hat_dtype

    # ---- lane tiling ---------------------------------------------------------
    # Per-lane VMEM bytes: double-buffered z-in (C) + z-out (C) + w_hat-out (M)
    # blocks, plus headroom for the live f32 temporaries inside the body
    # (z*z / logits / exp / w_hat / f32 z_out / astype copies).
    itemsize = 4
    per_lane = 2 * itemsize * (2 * C + M) + itemsize * (2 * C + 6 * M)

    n_blk = _cdiv(L, 128)                       # number of 128-lane columns
    if lane_tile is None:
        budget_blks = max(1, (vmem_block_budget_bytes // per_lane) // 128)
        cap_blks = max(1, max_tile_lanes // 128)
        max_blks = min(budget_blks, cap_blks)
        # Keep at least ~4 total grid steps when possible so both v7x cores work.
        min_tiles = min(n_blk, max(1, _cdiv(4, N)))
        n_tiles = max(_cdiv(n_blk, max_blks), min_tiles)
        lane_tile = _cdiv(n_blk, n_tiles) * 128
    else:
        lane_tile = max(128, int(lane_tile) // 128 * 128)
    n_tiles = _cdiv(L, lane_tile)

    z_flat = z.reshape(N, C, L)                 # no jnp.pad: ragged final block

    # ---- hoist memory-row normalization + transpose out of the grid ----------
    memory = memory.astype(jnp.float32)
    m_norm = jnp.sqrt(jnp.sum(memory * memory, axis=1, keepdims=True))
    mem_n = memory / jnp.maximum(m_norm, 1e-8)  # (M, C)
    mem_t = memory.T                            # (C, M)

    shrink_thres = float(lam) / M if hard_shrink else 0.0
    rem = L % lane_tile
    kernel = functools.partial(
        _memory_kernel, shrink_thres=shrink_thres, hard_shrink=hard_shrink,
        valid_lanes=rem if rem else None)

    # Estimated VMEM: pipelined blocks + temps + resident (M,C)/(C,M) matrices.
    est = lane_tile * per_lane + 2 * 2 * M * C * itemsize
    # Cap well below v7x's 64 MiB per-TC VMEM; still raises v5e's 16 MiB default.
    vmem_limit = int(min(48 * 1024 * 1024,
                         max(32 * 1024 * 1024, est + (8 << 20))))

    z_out_flat, w_hat = pl.pallas_call(
        kernel,
        out_shape=(
            jax.ShapeDtypeStruct((N, C, L), out_dtype),
            jax.ShapeDtypeStruct((N, M, L), w_hat_dtype),
        ),
        grid_spec=pltpu.PrefetchScalarGridSpec(
            num_scalar_prefetch=0,
            grid=(n_tiles, N),                                      # lane axis leads
            in_specs=[
                pl.BlockSpec((1, C, lane_tile), lambda l, n: (n, 0, l)),  # z slab
                pl.BlockSpec((M, C), lambda l, n: (0, 0)),                # mem_n (resident)
                pl.BlockSpec((C, M), lambda l, n: (0, 0)),                # mem_t (resident)
            ],
            out_specs=[
                pl.BlockSpec((1, C, lane_tile), lambda l, n: (n, 0, l)),
                pl.BlockSpec((1, M, lane_tile), lambda l, n: (n, 0, l)),
            ],
        ),
        compiler_params=pltpu.CompilerParams(
            dimension_semantics=("parallel", "parallel"),
            vmem_limit_bytes=vmem_limit,
        ),
    )(z_flat, mem_n, mem_t)

    return z_out_flat.reshape(N, C, D, H, W), w_hat


def _reference(z, memory, *, hard_shrink=True, lam=1.0):
    """Pure-JAX reference mirroring the PyTorch forward (returns softmax too)."""
    N, C, D, H, W = z.shape
    M = memory.shape[0]
    L = D * H * W
    zf = z.reshape(N, C, L)
    dots = jnp.einsum("mc,ncl->nml", memory, zf)
    zn = jnp.sqrt(jnp.sum(zf * zf, axis=1, keepdims=True))              # (N,1,L)
    mn = jnp.sqrt(jnp.sum(memory * memory, axis=1))[None, :, None]      # (1,M,1)
    logit = dots / jnp.maximum(zn * mn, 1e-8)
    w = jax.nn.softmax(logit, axis=1)
    if hard_shrink:
        thr = lam / M
        sh = w - thr
        w_hat = jnp.maximum(sh, 0.0) * w / (jnp.abs(sh) + 1e-15)
    else:
        w_hat = jnp.maximum(w, 0.0)
    w_hat = w_hat / jnp.maximum(jnp.sum(jnp.abs(w_hat), axis=1, keepdims=True), 1e-12)
    z_hat = jnp.einsum("nml,mc->ncl", w_hat, memory)
    return z_hat.reshape(N, C, D, H, W), w_hat, w


def _check(z, memory, *, lam=1.0, lane_tile=None):
    z_out, w_hat = memory_module_3d(z, memory, hard_shrink=True, lam=lam,
                                    lane_tile=lane_tile)
    jax.block_until_ready((z_out, w_hat))

    z_ref, w_hat_ref, w_soft_ref = _reference(z, memory, hard_shrink=True, lam=lam)

    N, C, D, H, W = z.shape
    M = memory.shape[0]
    L = D * H * W
    assert z_out.shape == z.shape
    assert w_hat.shape == (N, M, L)

    # hard_shrink_relu has a jump discontinuity at w == lam/M; exclude the rare
    # lane columns whose reference softmax lands within 1e-5 of the threshold,
    # where ulp-level reassociation can legitimately flip an entry.
    thr = lam / M
    ok_col = jnp.all(jnp.abs(w_soft_ref - thr) > 1e-5, axis=1)          # (N, L)
    assert float(jnp.mean(ok_col)) > 0.5

    atol = rtol = 1e-5
    err_w = jnp.abs(w_hat - w_hat_ref) - (atol + rtol * jnp.abs(w_hat_ref))
    assert bool(jnp.all(jnp.where(ok_col[:, None, :], err_w, -1.0) <= 0.0))

    mask_z = ok_col.reshape(N, 1, D, H, W)
    err_z = jnp.abs(z_out - z_ref) - (atol + rtol * jnp.abs(z_ref))
    assert bool(jnp.all(jnp.where(mask_z, err_z, -1.0) <= 0.0))


if __name__ == "__main__":
    key = jax.random.PRNGKey(0)
    k1, k2, k3, k4 = jax.random.split(key, 4)

    # Deterministic kaiming_uniform_ init of memory (M, C):
    # gain = sqrt(2) (a=0), fan_in = C, bound = gain * sqrt(3 / fan_in).
    def kaiming(k, m, c):
        bound = math.sqrt(2.0) * math.sqrt(3.0 / c)
        return jax.random.uniform(k, (m, c), dtype=jnp.float32,
                                  minval=-bound, maxval=bound)

    # Case 1: small shapes, L = 64 (< 128) -> exercises the ragged final block.
    N, C, D, H, W, mem_dim = 2, 32, 4, 4, 4, 16
    z1 = jax.random.normal(k1, (N, C, D, H, W), dtype=jnp.float32)
    mem1 = kaiming(k2, mem_dim, C)
    _check(z1, mem1, lam=1.0)

    # Case 2: N = 1, L = 512 (128-aligned) -> multi-tile grid, no pad/slice at all.
    N, C, D, H, W, mem_dim = 1, 32, 2, 16, 16, 16
    z2 = jax.random.normal(k3, (N, C, D, H, W), dtype=jnp.float32)
    mem2 = kaiming(k4, mem_dim, C)
    _check(z2, mem2, lam=1.0)

    print("KERNEL_OK")
</pallas_src>

<mosaic_0001>
module attributes {stable_mosaic.version = 11 : i64} {
  func.func @_memory_kernel(%arg0: i32, %arg1: i32, %arg2: memref<1x32x128xf32, #tpu.memory_space<vmem>>, %arg3: memref<16x32xf32, #tpu.memory_space<vmem>>, %arg4: memref<32x16xf32, #tpu.memory_space<vmem>>, %arg5: memref<1x32x128xf32, #tpu.memory_space<vmem>>, %arg6: memref<1x16x128xf32, #tpu.memory_space<vmem>>) attributes {dimension_semantics = [#tpu.dimension_semantics<parallel>, #tpu.dimension_semantics<parallel>], iteration_bounds = array<i64: 1, 2>, scalar_prefetch = 0 : i64, scratch_operands = 0 : i64, tpu.core_type = #tpu.core_type<tc>, window_params = [{transform_indices = @transform_0, window_bounds = array<i64: 1, 32, 128>}, {pipeline_mode = #tpu.pipeline_mode<synchronous>, transform_indices = @transform_1, window_bounds = array<i64: 16, 32>}, {pipeline_mode = #tpu.pipeline_mode<synchronous>, transform_indices = @transform_2, window_bounds = array<i64: 32, 16>}, {transform_indices = @transform_3, window_bounds = array<i64: 1, 32, 128>}, {transform_indices = @transform_4, window_bounds = array<i64: 1, 16, 128>}]} {
    %c0 = arith.constant 0 : index
    %c0_0 = arith.constant 0 : index
    %c0_1 = arith.constant 0 : index
    %0 = vector.load %arg2[%c0, %c0_0, %c0_1] : memref<1x32x128xf32, #tpu.memory_space<vmem>>, vector<1x32x128xf32>
    %1 = vector.shape_cast %0 : vector<1x32x128xf32> to vector<32x128xf32>
    %c0_2 = arith.constant 0 : index
    %c0_3 = arith.constant 0 : index
    %2 = vector.load %arg3[%c0_2, %c0_3] : memref<16x32xf32, #tpu.memory_space<vmem>>, vector<16x32xf32>
    %c0_4 = arith.constant 0 : index
    %c0_5 = arith.constant 0 : index
    %3 = vector.load %arg4[%c0_4, %c0_5] : memref<32x16xf32, #tpu.memory_space<vmem>>, vector<32x16xf32>
    %4 = tpu.iota {dimensions = array<i32: 1>} : vector<1x128xi32>
    %c0_i32 = arith.constant 0 : i32
    %5 = arith.cmpi eq, %arg0, %c0_i32 : i32
    %true = arith.constant true
    %6 = arith.xori %5, %true : i1
    %c64_i32 = arith.constant 64 : i32
    %7 = vector.broadcast %c64_i32 : i32 to vector<1x128xi32>
    %8 = arith.cmpi slt, %4, %7 : vector<1x128xi32>
    %9 = vector.broadcast %6 : i1 to vector<1x128xi1>
    %10 = arith.ori %9, %8 : vector<1x128xi1>
    %cst = arith.constant 0.000000e+00 : f32
    %11 = vector.shape_cast %10 : vector<1x128xi1> to vector<1x128xi1>
    %12 = vector.broadcast %11 : vector<1x128xi1> to vector<32x128xi1>
    %13 = vector.broadcast %cst : f32 to vector<32x128xf32>
    %14 = arith.select %12, %1, %13 : vector<32x128xi1>, vector<32x128xf32>
    %cst_6 = arith.constant dense<0.000000e+00> : vector<16x128xf32>
    %15 = tpu.matmul %2, %14, %cst_6 {dimension_numbers = #tpu.dot_dimension_numbers<[1], [0], [0], [1], [0, 0, 1, 1], [], []>} : vector<16x32xf32>, vector<32x128xf32>, vector<16x128xf32> -> vector<16x128xf32>
    %16 = arith.mulf %14, %14 : vector<32x128xf32>
    %cst_7 = arith.constant dense<0.000000e+00> : vector<128xf32>
    %17 = vector.multi_reduction <add>, %16, %cst_7 [0] : vector<32x128xf32> to vector<128xf32>
    %18 = vector.shape_cast %17 : vector<128xf32> to vector<1x128xf32>
    %19 = math.sqrt %18 : vector<1x128xf32>
    %cst_8 = arith.constant 9.99999993E-9 : f32
    %20 = vector.broadcast %cst_8 : f32 to vector<1x128xf32>
    %21 = arith.maximumf %19, %20 : vector<1x128xf32>
    %cst_9 = arith.constant 1.000000e+00 : f32
    %22 = vector.broadcast %cst_9 : f32 to vector<1x128xf32>
    %23 = arith.divf %22, %21 : vector<1x128xf32>
    %24 = vector.broadcast %23 : vector<1x128xf32> to vector<16x128xf32>
    %25 = arith.mulf %15, %24 : vector<16x128xf32>
    %cst_10 = arith.constant dense<0xFF800000> : vector<128xf32>
    %26 = vector.multi_reduction <maximumf>, %25, %cst_10 [0] : vector<16x128xf32> to vector<128xf32>
    %27 = vector.shape_cast %26 : vector<128xf32> to vector<1x128xf32>
    %28 = vector.broadcast %27 : vector<1x128xf32> to vector<16x128xf32>
    %29 = arith.subf %25, %28 : vector<16x128xf32>
    %30 = math.exp %29 : vector<16x128xf32>
    %cst_11 = arith.constant dense<0.000000e+00> : vector<128xf32>
    %31 = vector.multi_reduction <add>, %30, %cst_11 [0] : vector<16x128xf32> to vector<128xf32>
    %32 = vector.shape_cast %31 : vector<128xf32> to vector<1x128xf32>
    %cst_12 = arith.constant 1.000000e+00 : f32
    %33 = vector.broadcast %cst_12 : f32 to vector<1x128xf32>
    %34 = arith.divf %33, %32 : vector<1x128xf32>
    %35 = vector.broadcast %34 : vector<1x128xf32> to vector<16x128xf32>
    %36 = arith.mulf %30, %35 : vector<16x128xf32>
    %cst_13 = arith.constant 6.250000e-02 : f32
    %37 = vector.broadcast %cst_13 : f32 to vector<16x128xf32>
    %38 = arith.cmpf ogt, %36, %37 : vector<16x128xf32>
    %cst_14 = arith.constant 0.000000e+00 : f32
    %39 = vector.broadcast %cst_14 : f32 to vector<16x128xf32>
    %40 = arith.select %38, %36, %39 : vector<16x128xi1>, vector<16x128xf32>
    %cst_15 = arith.constant dense<0.000000e+00> : vector<128xf32>
    %41 = vector.multi_reduction <add>, %40, %cst_15 [0] : vector<16x128xf32> to vector<128xf32>
    %42 = vector.shape_cast %41 : vector<128xf32> to vector<1x128xf32>
    %cst_16 = arith.constant 9.99999996E-13 : f32
    %43 = vector.broadcast %cst_16 : f32 to vector<1x128xf32>
    %44 = arith.maximumf %42, %43 : vector<1x128xf32>
    %cst_17 = arith.constant 1.000000e+00 : f32
    %45 = vector.broadcast %cst_17 : f32 to vector<1x128xf32>
    %46 = arith.divf %45, %44 : vector<1x128xf32>
    %47 = vector.broadcast %46 : vector<1x128xf32> to vector<16x128xf32>
    %48 = arith.mulf %40, %47 : vector<16x128xf32>
    %c0_18 = arith.constant 0 : index
    %c0_19 = arith.constant 0 : index
    %c0_20 = arith.constant 0 : index
    %49 = vector.load %arg6[%c0_18, %c0_19, %c0_20] : memref<1x16x128xf32, #tpu.memory_space<vmem>>, vector<1x16x128xf32>
    %50 = vector.shape_cast %49 : vector<1x16x128xf32> to vector<16x128xf32>
    %51 = vector.shape_cast %48 : vector<16x128xf32> to vector<1x16x128xf32>
    tpu.vector_store %arg6[%c0_18, %c0_19, %c0_20], %51 {strides = array<i32>} : memref<1x16x128xf32, #tpu.memory_space<vmem>>, vector<1x16x128xf32>,
    %cst_21 = arith.constant dense<0.000000e+00> : vector<32x128xf32>
    %52 = tpu.matmul %3, %48, %cst_21 {dimension_numbers = #tpu.dot_dimension_numbers<[1], [0], [0], [1], [0, 0, 1, 1], [], []>} : vector<32x16xf32>, vector<16x128xf32>, vector<32x128xf32> -> vector<32x128xf32>
    %c0_22 = arith.constant 0 : index
    %c0_23 = arith.constant 0 : index
    %c0_24 = arith.constant 0 : index
    %53 = vector.load %arg5[%c0_22, %c0_23, %c0_24] : memref<1x32x128xf32, #tpu.memory_space<vmem>>, vector<1x32x128xf32>
    %54 = vector.shape_cast %53 : vector<1x32x128xf32> to vector<32x128xf32>
    %55 = vector.shape_cast %52 : vector<32x128xf32> to vector<1x32x128xf32>
    tpu.vector_store %arg5[%c0_22, %c0_23, %c0_24], %55 {strides = array<i32>} : memref<1x32x128xf32, #tpu.memory_space<vmem>>, vector<1x32x128xf32>,
    return
  }
  func.func @transform_0(%arg0: i32, %arg1: i32) -> (i32, i32, i32) {
    %c0_i32 = arith.constant 0 : i32
    %c0_i32_0 = arith.constant 0 : i32
    return %arg1, %c0_i32, %arg0 : i32, i32, i32
  }
  func.func @transform_1(%arg0: i32, %arg1: i32) -> (i32, i32) {
    %c0_i32 = arith.constant 0 : i32
    %c0_i32_0 = arith.constant 0 : i32
    %c0_i32_1 = arith.constant 0 : i32
    return %c0_i32, %c0_i32_0 : i32, i32
  }
  func.func @transform_2(%arg0: i32, %arg1: i32) -> (i32, i32) {
    %c0_i32 = arith.constant 0 : i32
    %c0_i32_0 = arith.constant 0 : i32
    %c0_i32_1 = arith.constant 0 : i32
    return %c0_i32, %c0_i32_0 : i32, i32
  }
  func.func @transform_3(%arg0: i32, %arg1: i32) -> (i32, i32, i32) {
    %c0_i32 = arith.constant 0 : i32
    %c0_i32_0 = arith.constant 0 : i32
    return %arg1, %c0_i32, %arg0 : i32, i32, i32
  }
  func.func @transform_4(%arg0: i32, %arg1: i32) -> (i32, i32, i32) {
    %c0_i32 = arith.constant 0 : i32
    %c0_i32_0 = arith.constant 0 : i32
    return %arg1, %c0_i32, %arg0 : i32, i32, i32
  }
}

</mosaic_0001>

<bundles_post_ra>
// kernel: tpu_custom_call.1
= control target key start
LH: loop header
LB: loop body
LE: loop exit
PB: predicated region body
PF: predicated region fallthrough
CT: control target
= control target key end

     0   :  { %10 = vsyncpa [#allocation3], 0  ;;  %s1273_s0 = inlined_call_operand.hbm [shape: f32[2,32,64], index: 0, kind: input, shape index: {}]   ;;  %s1274_s1 = inlined_call_operand.vmem [shape: f32[16,32], index: 1, kind: input, shape index: {}]   ;;  %s1275_s2 = inlined_call_operand.vmem [shape: f32[32,16], index: 2, kind: input, shape index: {}]   ;;  %s1276_s3 = inlined_call_operand.hbm [shape: f32[2,32,64], index: 3, kind: output, shape index: {0}]   ;;  %s1277_s4 = inlined_call_operand.hbm [shape: f32[2,16,64], index: 4, kind: output, shape index: {1}]  }
   0x1   :  { %12 = vsyncpa [#allocation3 + $0x1], 0 }
   0x2   :  { %13 = vsyncpa [#allocation4], 0 }
   0x3   :  { %15 = vsyncpa [#allocation4 + $0x1], 0 }
   0x4   :  { %16 = vsyncpa [#allocation7], 0 }
   0x5   :  { %18 = vsyncpa [#allocation7 + $0x1], 0  ;;  %s1019_s15 = smov 0   ;;  %s1021_s16 = smov 0  }
   0x6   :  { %s1023_s17 = smov 0   ;;  %s1025_s18 = smov 0  }
   0x7   :  { %s1027_s19 = smov 0   ;;  %s1029_s20 = smov 0  }
   0x8 LB: > { %s677_s21 = sadd.s32 4294967295, %s985_s20   ;;  %s678_s22 = sadd.s32 4294967294, %s985_s20   ;;  %s985_s20 = sphi %s1029_s20, %s24_s20   ;;  %s981_s19 = sphi %s1027_s19, %s1294_s19   ;;  %s977_s18 = sphi %s1025_s18, %s1293_s18   ;;  %s973_s17 = sphi %s1023_s17, %s1292_s17   ;;  %s969_s16 = sphi %s1021_s16, %s1291_s16   ;;  %s965_s15 = sphi %s1019_s15, %s1290_s15  }
   0x9   : > { %s33_s23 = sadd.s32 1, %s981_s19  ;;  %s45_s24 = sadd.s32 1, %s973_s17 }
   0xa   : > { %p34_p0 = scmp.ge.s32.totalorder %s33_s23, 2  ;;  %p52_p1 = scmp.ne.s32.totalorder %s973_s17, %s969_s16 }
   0xb   : > { %p53_p2 = scmp.eq.s32.totalorder %s985_s20, 0  ;;  %p58_p3 = scmp.ne.s32.totalorder %s969_s16, %s965_s15 }
   0xc   : > { %s1296_s23 = smov (%p34_p0, %s33_s23), 0  ;;  %p59_p5 = scmp.eq.s32.totalorder %s677_s21, 0 }
   0xd   : > { %p1060_p4 = por %p53_p2, %p52_p1  ;;  %s40_s26 = ssub.s32 %s981_s19, %s1296_s23 }
   0xe   : > { %p126_p6 = scmp.eq.s32.totalorder %s677_s21, 1  ;;  %p43_p7 = scmp.eq.s32.totalorder %s40_s26, 0 }
   0xf   : > { %p1066_p8 = por %p59_p5, %p58_p3  ;;  %p132_p10 = scmp.eq.s32.totalorder %s678_s22, 1 }
  0x10   : > { %p1070_p9 = por %p126_p6, %p52_p1  ;;  %p775_p13 = scmp.lt.s32.totalorder %s985_s20, 2 }
  0x11   : > { %s1075_s29 = scalar_select %p43_p7, %s973_s17, %s45_s24  }
  0x12   : > { %s1281_s28 = scalar_select %p1070_p9, 1, 0 }
  0x13   : > { %p1077_p11 = por %p132_p10, %p58_p3  ;;  %s186_s5 = sand.u32 1, %s973_s17  }
  0x14   : > { %s681_s6 = sshll.u32 %s186_s5, 5  ;;  %s706_s7 = sshll.u32 %s981_s19, 9 }
  0x15   : > { %s1282_s30 = scalar_select %p1077_p11, 1, 0 }
  0x16   : > { %s1088_s10 = scalar_lea.hbm %s1273_s0, %s706_s7  ;;  %s190_s11 = scalar_lea.vmem [#allocation2], %s681_s6 }
  0x17   : > { %s198_s12 = sshll.u32 %s190_s11, 4  ;;  %p1094_p0 = pnand %p775_p13, %p1060_p4  ;;  %s1090_s12 = int_to_ptr.vmem [resolvable:$true] %s198_s12 }
  0x18   : > { %s1099_s14 = scalar_lea.sflag [#allocation3], %s186_s5  ;;  %s841_s21 = scalar_lea.hbm %s1088_s10, 512 }
  0x19   : > { %p842_p2 = scmp.ne.s32.totalorder %s1088_s10, %s841_s21  ;;  %p843_p3 = pneg %p1094_p0 }
  0x1a   : > { %s846_s25 = scalar_lea.hbm %s1273_s0, 1024  ;;  %p847_p4 = scmp.lt.u32.totalorder %s1088_s10, %s1273_s0 }
  0x1b   : > { %p844_p5 = pnand %p843_p3, %p842_p2  ;;  %p848_p7 = scmp.lt.u32.totalorder %s846_s25, %s841_s21 }
  0x1c   : > { %p850_p13 = scmp.lt.u32.totalorder %s841_s21, %s1088_s10 }
  0x1d   : > { %p845_p6 = pneg %p844_p5  ;;  %p849_p10 = por %p848_p7, %p847_p4 }
  0x1f   : > { %p851_p12 = por %p850_p13, %p849_p10 }
  0x21   : > { %p852_p1 = pnand %p851_p12, %p845_p6 }
  0x23   : > { %855 = shalt.err (!%p852_p1)
}
  0x24   : > { %s856_s5 = scalar_lea.vmem %s1090_s12, 512  ;;  %s987_s7 = smov [#allocation2]  }
  0x25   : > { %p857_p2 = scmp.ne.s32.totalorder %s1090_s12, %s856_s5  ;;  %s861_s8 = sshll.u32 %s987_s7, 4  ;;  %s862_s8 = int_to_ptr.vmem [resolvable:$false] %s861_s8 }
  0x26   : > { %s863_s9 = scalar_lea.vmem %s862_s8, 1024  ;;  %p864_p9 = scmp.lt.s32.totalorder %s1090_s12, %s862_s8 }
  0x27   : > { %p859_p5 = pnand %p857_p2, %p843_p3  ;;  %p865_p4 = scmp.lt.s32.totalorder %s863_s9, %s856_s5 }
  0x29   : > { %p860_p11 = pneg %p859_p5  ;;  %p866_p7 = por %p865_p4, %p864_p9 }
  0x2b   : > { %p867_p10 = pnand %p866_p7, %p860_p11 }
  0x2d   : > { %870 = shalt.err (!%p867_p10)
}
  0x2e   : > { %s988_s11 = smov 128   ;;  %s989_s21 = smov 8  }
  0x2f   : > { %767 = dma.hbm_to_vmem [thread:$0]  (!%p1094_p0), %s1088_s10, 512, %s1090_s12, %s1099_s14, %s988_s11, %s988_s11, %s989_s21  }
  0x30   : > { %p206_p12 = scmp.lt.s32.totalorder %s985_s20, 3  ;;  %p1284_p1 = scmp.ge.s32.totalorder %s985_s20, 1 }
  0x32   : > { %p207_p3 = pnand %p1284_p1, %p206_p12 }
  0x33   : > { %s1131_s22 = sand.u32 (!%p207_p3), 1, %s969_s16  }
  0x34   : > { %210 = sbr.rel (%p207_p3) target bundleno = 614 (0x266), region = 32  ;;  %s685_s24 = sshll.u32 (!%p207_p3), %s1131_s22, 5 }
  0x35   : > { %s213_s25 = scalar_lea.sflag (!%p207_p3), [#allocation3], %s1131_s22  ;;  %s216_s26 = scalar_lea.vmem (!%p207_p3), [#allocation2], %s685_s24 }
  0x3b   : > { %952 = dma.done.wait (%p1066_p8), %s213_s25, 512  }
  0x3c   : > { %954 = vsyncadd (%p1066_p8), %s213_s25, 4294966784  ;;  %v256_v0 = vlaneseq  ;;  %vm270_vm2 = vcmask 261120   ;;  %v246_v3 = vld [vmem:[%s216_s26] sm:$0xff]  ;;  %v247_v4 = vld [vmem:[%s216_s26 + $0x8] sm:$0xff]  ;;  %vm419_vm3 = vcmask 130048   ;;  %s687_s5 = sshll.u32 %s1131_s22, 4 }
  0x3d   : > { %v248_v5 = vld [vmem:[%s216_s26 + $0x10] sm:$0xff]  ;;  %v742_v9 = vpack.c.bf16 %v247_v4, %v246_v3  ;;  %v249_v10 = vld [vmem:[%s216_s26 + $0x18] sm:$0xff]  ;;  %v250_v11 = vld [vmem:[%s1274_s1] sm:$0xff]  ;;  %s245_s7 = scalar_lea.vmem [#allocation6], %s687_s5  ;;  %s708_s12 = sshll.u32 %s977_s18, 8 }
  0x3e   : > { %v257_v1 = vand.u32 127, %v256_v0  ;;  %729 = vmatprep.mubr.msk.f32.mxu0 %vm270_vm2, %v250_v11  ;;  %v748_v16 = vpack.c.bf16 %v249_v10, %v248_v5  ;;  %v251_v21 = vld [vmem:[%s1274_s1 + $0x8] sm:$0xff]  ;;  %v252_v28 = vld [vmem:[%s1275_s2] sm:$0xff]  ;;  %s558_s10 = sshll.u32 %s245_s7, 4  ;;  %s1184_s14 = scalar_lea.hbm %s1277_s4, %s708_s12  ;;  %s1179_s10 = int_to_ptr.vmem [resolvable:$true] %s558_s10 }
  0x3f   : > { %736 = vmatprep.mubr.msk.f32.mxu1 %vm419_vm3, %v252_v28  ;;  %s527_s6 = scalar_lea.sflag [#allocation7], %s1131_s22  ;;  %s871_s5 = scalar_lea.vmem %s1179_s10, 256 }
  0x40   : > { %vm259_vm0 = vcmp.lt.s32.totalorder %v257_v1, 64  ;;  %p872_p8 = scmp.ne.s32.totalorder %s1179_s10, %s871_s5  ;;  %p1287_p9 = scmp.ne.s32.totalorder %s1281_s28, 0 }
  0x41   : > { %vm1141_vm1 = vmpackc.low %vm259_vm0, %vm259_vm0  ;;  %v266_v6 = vsel %vm259_vm0, %v246_v3, 0.0  ;;  %v267_v7 = vsel %vm259_vm0, %v247_v4, 0.0  ;;  %v268_v8 = vsel %vm259_vm0, %v248_v5, 0.0  ;;  %v269_v15 = vsel %vm259_vm0, %v249_v10, 0.0  ;;  %s990_s8 = smov [#allocation6]  }
  0x42   : > { %v352_v12 = vmul.f32 %v266_v6, %v266_v6  ;;  %v353_v13 = vmul.f32 %v267_v7, %v267_v7  ;;  %v354_v14 = vmul.f32 %v268_v8, %v268_v8  ;;  %744 = vmatprep.subr.msk.bf16.mxu0 %vm1141_vm1, %v742_v9  ;;  %v355_v18 = vmul.f32 %v269_v15, %v269_v15  ;;  %v255_v15 = vld [vmem:[%s1275_s2 + $0x18] sm:$0xff]  ;;  %p873_p11 = pnand %p872_p8, %p1287_p9  ;;  %s875_s9 = sshll.u32 %s990_s8, 4  ;;  %s876_s9 = int_to_ptr.vmem [resolvable:$false] %s875_s9 }
  0x43   : > { %747 = vmatpush3.bf16.msk.msra.mxu0 %vm1141_vm1, %v742_v9  ;;  %p878_p6 = scmp.lt.s32.totalorder %s1179_s10, %s876_s9 }
  0x44   : > { %v356_v17 = vadd.f32 %v353_v13, %v352_v12  ;;  %750 = vmatprep.subr.msk.bf16.mxu0 %vm1141_vm1, %v748_v16  ;;  %v253_v13 = vld [vmem:[%s1275_s2 + $0x8] sm:$0xff]  ;;  %p874_p0 = pneg %p873_p11 }
  0x46   : > { %v357_v19 = vadd.f32 %v356_v17, %v354_v14  ;;  %v254_v14 = vld [vmem:[%s1275_s2 + $0x10] sm:$0xff] }
  0x47   : > { %753 = vmatpush3.bf16.msk.msra.mxu0 %vm1141_vm1, %v748_v16 }
  0x48   : > { %v358_v20 = vadd.f32 %v357_v19, %v355_v18 }
  0x4a   : > { %730 = vmatmul.mubr.msk.f32.vlgmr.msra.gmra.mrb[0].mxu0 %vm270_vm2, %v251_v21  ;;  %v359_v22 = vrot.slane %v358_v20, 4 }
  0x4c   : > { %v360_v23 = vadd.f32 %v359_v22, %v358_v20 }
  0x4e   : > { %v361_v24 = vrot.slane %v360_v23, 2 }
  0x50   : > { %v362_v25 = vadd.f32 %v361_v24, %v360_v23 }
  0x52   : > { %v363_v26 = vrot.slane %v362_v25, 1 }
  0x54   : > { %v364_v27 = vadd.f32 %v363_v26, %v362_v25 }
  0x56   : > { %829 = vrsqrt.f32 %v364_v27  ;;  %vm367_vm4 = vcmp.eq.f32.partialorder %v364_v27, inf  ;;  %v370_v31 = vand.u32 2147483648, %v364_v27  ;;  %vm369_vm5 = vcmp.eq.f32.partialorder %v364_v27, 0.0 }
  0x60   : > { %v830_v29 = vpop.eup %829 }
  0x61   : > { %v366_v30 = vmul.f32 %v830_v29, %v364_v27 }
  0x63   : > { %v368_v32 = vsel %vm367_vm4, %v364_v27, %v366_v30 }
  0x64   : > { %v371_v33 = vsel %vm369_vm5, %v370_v31, %v368_v32 }
  0x65   : > { %v372_v34 = vmax.f32 %v371_v33, 1e-08 }
  0x67   : > { %831 = vrcp.f32 %v372_v34 }
  0x71   : > { %v832_v35 = vpop.eup %831 }
 0x11d   : > { %v731_v36 = vpop.f32.mrb[0].mxu0 }
 0x11e   : > { %v376_v37 = vmul.f32 %v832_v35, %v731_v36  ;;  %v343_v38 = vpop.f32.mrb[1].mxu0 }
 0x11f   : > { %v375_v39 = vmul.f32 %v832_v35, %v343_v38 }
 0x121   : > { %v377_v40 = vmax.f32 %v375_v39, %v376_v37 }
 0x123   : > { %v378_v41 = vrot.slane %v377_v40, 4 }
 0x125   : > { %v379_v42 = vmax.f32 %v377_v40, %v378_v41 }
 0x127   : > { %v380_v43 = vrot.slane %v379_v42, 2 }
 0x129   : > { %v381_v44 = vmax.f32 %v379_v42, %v380_v43 }
 0x12b   : > { %v382_v45 = vrot.slane %v381_v44, 1 }
 0x12d   : > { %v383_v46 = vmax.f32 %v381_v44, %v382_v45 }
 0x12f   : > { %v384_v47 = vsub.f32 %v375_v39, %v383_v46  ;;  %v385_v48 = vsub.f32 %v376_v37, %v383_v46 }
 0x131   : > { %v386_v49 = vmul.f32 1.442695, %v384_v47  ;;  %v388_v50 = vmul.f32 1.442695, %v385_v48 }
 0x133   : > { %833 = vpow2.f32 %v386_v49 }
 0x134   : > { %835 = vpow2.f32 %v388_v50 }
 0x13d   : > { %v834_v51 = vpop.eup %833 }
 0x13e   : > { %v836_v52 = vpop.eup %835 }
 0x13f   : > { %v390_v53 = vadd.f32 %v836_v52, %v834_v51 }
 0x141   : > { %v391_v54 = vrot.slane %v390_v53, 4 }
 0x143   : > { %v392_v55 = vadd.f32 %v391_v54, %v390_v53 }
 0x145   : > { %v393_v56 = vrot.slane %v392_v55, 2 }
 0x147   : > { %v394_v57 = vadd.f32 %v393_v56, %v392_v55 }
 0x149   : > { %v395_v58 = vrot.slane %v394_v57, 1 }
 0x14b   : > { %v396_v59 = vadd.f32 %v395_v58, %v394_v57 }
 0x14d   : > { %837 = vrcp.f32 %v396_v59 }
 0x157   : > { %v838_v60 = vpop.eup %837 }
 0x158   : > { %v399_v61 = vmul.f32 %v838_v60, %v834_v51  ;;  %v400_v62 = vmul.f32 %v838_v60, %v836_v52 }
 0x15a   : > { %vm401_vm6 = vcmp.gt.f32.partialorder %v399_v61, 0.0625  ;;  %vm402_vm7 = vcmp.gt.f32.partialorder %v400_v62, 0.0625 }
 0x15b   : > { %v403_v63 = vsel %vm401_vm6, %v399_v61, 0.0  ;;  %v404_v0 = vsel %vm402_vm7, %v400_v62, 0.0 }
 0x15c   : > { %v405_v1 = vadd.f32 %v404_v0, %v403_v63 }
 0x15e   : > { %v406_v2 = vrot.slane %v405_v1, 4 }
 0x160   : > { %v407_v3 = vadd.f32 %v406_v2, %v405_v1 }
 0x162   : > { %v408_v4 = vrot.slane %v407_v3, 2 }
 0x164   : > { %v409_v5 = vadd.f32 %v408_v4, %v407_v3 }
 0x166   : > { %v410_v6 = vrot.slane %v409_v5, 1 }
 0x168   : > { %v411_v7 = vadd.f32 %v410_v6, %v409_v5 }
 0x16a   : > { %v412_v8 = vmax.f32 %v411_v7, 1e-12 }
 0x16c   : > { %839 = vrcp.f32 %v412_v8 }
 0x176   : > { %v840_v9 = vpop.eup %839 }
 0x177   : > { %v415_v10 = vmul.f32 %v840_v9, %v403_v63  ;;  %v416_v11 = vmul.f32 %v840_v9, %v404_v0 }
 0x179   : > { %417 = vst [vmem:[%s245_s7] sm:$0xff] %v415_v10  ;;  %418 = vst [vmem:[%s245_s7 + $0x8] sm:$0xff] %v416_v11  ;;  %v754_v12 = vpack.c.bf16 %v416_v11, %v415_v10  ;;  %s877_s7 = scalar_lea.vmem %s876_s9, 512 }
 0x17a   : > { %p879_p13 = scmp.lt.s32.totalorder %s877_s7, %s871_s5 }
 0x17b   : > { %755 = vmatprep.subr.bf16.mxu1 %v754_v12 }
 0x17c   : > { %757 = vmatpush3.bf16.msra.mxu1 %v754_v12  ;;  %p880_p2 = por %p879_p13, %p878_p6 }
 0x17e   : > { %p881_p5 = pnand %p880_p2, %p874_p0 }
 0x17f   : > { %737 = vmatmul.mubr.msk.f32.vlgmr.msra.gmra.mrb[0].mxu1 %vm419_vm3, %v253_v13 }
 0x180   : > { %739 = vmatprep.mubr.msk.f32.mxu1 %vm419_vm3, %v254_v14 }
 0x183   : > { %740 = vmatmul.mubr.msk.f32.gmra.mrb[2].mxu1 %vm419_vm3, %v255_v15 }
 0x184   : > { %884 = shalt.err (!%p881_p5)
}
 0x185   : > { %s885_s11 = scalar_lea.hbm %s1184_s14, 256  ;;  %s889_s26 = scalar_lea.hbm %s1277_s4, 512 }
 0x186   : > { %p886_p4 = scmp.ne.s32.totalorder %s1184_s14, %s885_s11  ;;  %p890_p12 = scmp.lt.u32.totalorder %s1184_s14, %s1277_s4 }
 0x187   : > { %p891_p1 = scmp.lt.u32.totalorder %s889_s26, %s885_s11  ;;  %p893_p8 = scmp.lt.u32.totalorder %s885_s11, %s1184_s14 }
 0x188   : > { %p887_p7 = pnand %p886_p4, %p1287_p9 }
 0x189   : > { %p892_p3 = por %p891_p1, %p890_p12 }
 0x18a   : > { %p888_p10 = pneg %p887_p7 }
 0x18b   : > { %p894_p11 = por %p893_p8, %p892_p3 }
 0x18d   : > { %p895_p0 = pnand %p894_p11, %p888_p10 }
 0x18f   : > { %898 = shalt.err (!%p895_p0)
}
 0x190   : > { %s991_s13 = smov 128   ;;  %s992_s5 = smov 8  }
 0x191   : > { %761 = dma.vmem_to_hbm [thread:$0]  (%p1287_p9), %s1179_s10, 256, %s1184_s14, %s527_s6, %s991_s13, %s991_s13, %s992_s5  }
 0x192   : > { %s238_s8 = scalar_lea.vmem [#allocation5], %s685_s24  ;;  %s707_s7 = sshll.u32 %s977_s18, 9 }
 0x193   : > { %s541_s9 = sshll.u32 %s238_s8, 4  ;;  %s1221_s25 = scalar_lea.hbm %s1276_s3, %s707_s7  ;;  %s1216_s9 = int_to_ptr.vmem [resolvable:$true] %s541_s9 }
 0x194   : > { %s522_s24 = scalar_lea.sflag [#allocation4], %s1131_s22  ;;  %s899_s10 = scalar_lea.vmem %s1216_s9, 512 }
 0x195   : > { %p900_p6 = scmp.ne.s32.totalorder %s1216_s9, %s899_s10  ;;  %s993_s18 = smov [#allocation5]  }
 0x196   : > { %s903_s14 = sshll.u32 %s993_s18, 4  ;;  %s904_s14 = int_to_ptr.vmem [resolvable:$false] %s903_s14 }
 0x197   : > { %p901_p13 = pnand %p900_p6, %p1287_p9  ;;  %s905_s6 = scalar_lea.vmem %s904_s14, 1024 }
 0x198   : > { %p906_p5 = scmp.lt.s32.totalorder %s1216_s9, %s904_s14  ;;  %p907_p4 = scmp.lt.s32.totalorder %s905_s6, %s899_s10 }
 0x199   : > { %p902_p2 = pneg %p901_p13 }
 0x19a   : > { %p908_p7 = por %p907_p4, %p906_p5 }
 0x19c   : > { %p909_p10 = pnand %p908_p7, %p902_p2 }
 0x252   : > { %v738_v16 = vpop.f32.mrb[0].mxu1 }
 0x253   : > { %518 = vst [vmem:[%s238_s8 + $0x8] sm:$0xff] %v738_v16  ;;  %v498_v17 = vpop.f32.mrb[1].mxu1 }
 0x254   : > { %517 = vst [vmem:[%s238_s8] sm:$0xff] %v498_v17 }
 0x256   : > { %v741_v18 = vpop.f32.mrb[2].mxu1 }
 0x257   : > { %520 = vst [vmem:[%s238_s8 + $0x18] sm:$0xff] %v741_v18  ;;  %v508_v19 = vpop.f32.mrb[3].mxu1 }
 0x258   : > { %519 = vst [vmem:[%s238_s8 + $0x10] sm:$0xff] %v508_v19 }
 0x259   : > { %912 = shalt.err (!%p909_p10)
}
 0x25a   : > { %s913_s26 = scalar_lea.hbm %s1221_s25, 512  ;;  %s917_s8 = scalar_lea.hbm %s1276_s3, 1024 }
 0x25b   : > { %p914_p12 = scmp.ne.s32.totalorder %s1221_s25, %s913_s26  ;;  %p918_p8 = scmp.lt.u32.totalorder %s1221_s25, %s1276_s3 }
 0x25c   : > { %p919_p11 = scmp.lt.u32.totalorder %s917_s8, %s913_s26  ;;  %p921_p6 = scmp.lt.u32.totalorder %s913_s26, %s1221_s25 }
 0x25d   : > { %p915_p1 = pnand %p914_p12, %p1287_p9 }
 0x25e   : > { %p920_p0 = por %p919_p11, %p918_p8 }
 0x25f   : > { %p916_p3 = pneg %p915_p1 }
 0x260   : > { %p922_p13 = por %p921_p6, %p920_p0 }
 0x262   : > { %p923_p2 = pnand %p922_p13, %p916_p3 }
 0x264   : > { %926 = shalt.err (!%p923_p2)
}
 0x265   : > { %760 = dma.vmem_to_hbm [thread:$0]  (%p1287_p9), %s1216_s9, 512, %s1221_s25, %s522_s24, %s991_s13, %s991_s13, %s992_s5  }
 0x266 PF: > { %s573_s21 = sand.u32 1, %s965_s15   ;;  %p1288_p5 = scmp.ne.s32.totalorder %s1282_s30, 0 }
 0x267   : > { %p1289_p4 = scmp.ge.s32.totalorder %s985_s20, 2  ;;  %s574_s10 = scalar_lea.sflag [#allocation4], %s573_s21 }
 0x269   : > { %p769_p7 = pnand %p1289_p4, %p1288_p5 }
 0x26b   : > { %956 = dma.done.wait (!%p769_p7), %s574_s10, 512  }
 0x26c   : > { %958 = vsyncadd (!%p769_p7), %s574_s10, 4294966784  ;;  %s583_s28 = scalar_lea.sflag [#allocation7], %s573_s21 }
 0x26d   : > { %960 = dma.done.wait (!%p769_p7), %s583_s28, 256  }
 0x26e   : > { %962 = vsyncadd (!%p769_p7), %s583_s28, 4294967040  ;;  %s24_s20 = sadd.s32 1, %s985_s20   ;;  %s1290_s15 = smov %s969_s16 }
 0x26f   : > { %p21_p10 = scmp.ge.s32.totalorder %s24_s20, 4   ;;  %s1291_s16 = smov %s973_s17 }
 0x270   : > { %s1292_s17 = smov %s1075_s29  ;;  %s1293_s18 = smov %s981_s19 }
 0x271   : > { %s1294_s19 = smov %s1296_s23  ;;  %23 = sbr.rel (!%p21_p10) target bundleno = 8 (0x8), region = 94 }
 0x278   :  { %588 = vsyncpa [#allocation3], 1 }
 0x279   :  { %590 = vsyncpa [#allocation3 + $0x1], 1 }
 0x27a   :  { %591 = vsyncpa [#allocation4], 1 }
 0x27b   :  { %593 = vsyncpa [#allocation4 + $0x1], 1 }
 0x27c   :  { %594 = vsyncpa [#allocation7], 1 }
 0x27d   :  { %596 = vsyncpa [#allocation7 + $0x1], 1 }

</bundles_post_ra>
